<compile_context>
chip_gen: v6e
topology: v6e:2x2x1
jax: 0.10.0
libtpu: 0.0.40
codegen_flags: <defaults>
</compile_context>

<pallas_src>
import math

import jax
import jax.numpy as jnp
import numpy as np
from jax.experimental import pallas as pl
from jax.experimental.pallas import tpu as pltpu


def _round_up(x, m):
    return ((x + m - 1) // m) * m


# ----------------------------- Pallas kernel --------------------------------
def _make_mixconv_kernel(taps, c1, kd_pad, tm, bias_row):
    """taps: static flat offsets d = kh*Wi + kw (Python ints) of the Kmax^2 taps."""

    def kernel(w_ref, x_ref, o_ref, p_ref):
        # w_ref: (C2, Kd_pad) bf16   fused block-diag weight, BN scale folded,
        #                            BN bias as an extra column (matmul-folded)
        # x_ref: (1, 1, C1, tw) bf16 flattened padded-image chunk (incl. halo)
        # o_ref: (1, C2, tm)   bf16  lane-dense output tile (flat h*Wi + w order)
        # p_ref: (Kd_pad, tm)  f32   VMEM scratch: implicit-im2col patch tile
        for t, d in enumerate(taps):                       # static -> static slices
            p_ref[t * c1:(t + 1) * c1, :] = (
                x_ref[0, 0, :, d:d + tm].astype(jnp.float32))
        # bias row (ones) + zero padding rows (Kd alignment to 16)
        p_ref[bias_row:bias_row + 1, :] = jnp.ones((1, tm), jnp.float32)
        if kd_pad > bias_row + 1:
            p_ref[bias_row + 1:, :] = jnp.zeros((kd_pad - bias_row - 1, tm),
                                                jnp.float32)

        # single fused matmul: conv (all branches) + BN scale + BN bias
        acc = jnp.dot(w_ref[...], p_ref[...].astype(jnp.bfloat16),
                      preferred_element_type=jnp.float32)   # (C2, tm) f32
        # SiLU epilogue, f32 math (v5e-safe), exact reciprocal (EUP exp + div)
        sig = pl.reciprocal(1.0 + jnp.exp(-acc))
        o_ref[0, :, :] = (acc * sig).astype(o_ref.dtype)

    return kernel


def fused_mixconv_bn_silu(xtiles, w_fused, *, taps, c1, c2, tm, me_pad,
                          kd_pad, bias_row):
    """xtiles: (N, n_m, C1, tw) bf16 overlapping (halo'd) flat-image chunks.
    w_fused: (C2, Kd_pad) f32 (BN scale folded, bias column appended).
    Returns (N, C2, me_pad) bf16 in flat (h*Wi + w) order."""
    N, n_m, _, tw = xtiles.shape
    kernel = _make_mixconv_kernel(taps, c1, kd_pad, tm, bias_row)

    # advisory cost estimate for the XLA scheduler
    flops = int(2 * N * n_m * c2 * kd_pad * tm)
    transcendentals = int(N * n_m * c2 * tm)
    bytes_accessed = int(xtiles.size * 2 + c2 * kd_pad * 2 + N * c2 * me_pad * 2)
    cost = pl.CostEstimate(flops=flops, transcendentals=transcendentals,
                           bytes_accessed=bytes_accessed)

    # explicit VMEM budget: 2x(x chunk) + 2x(out tile) + weight + patch scratch.
    # Demo needs ~tens of KB; production sizing per review: tm 1024-2048 with
    # ~64-96 MiB on v5e/v6e (128 MiB physical), cap tm ~1024 on v7x (64 MiB).
    need = (2 * c1 * tw * 2) + (2 * c2 * tm * 2) + (c2 * kd_pad * 2) \
           + (kd_pad * tm * 4)
    vmem_limit = int(min(64 * 1024 * 1024, max(32 * 1024 * 1024, 8 * need)))

    out = pl.pallas_call(
        kernel,
        out_shape=jax.ShapeDtypeStruct((N, c2, me_pad), jnp.bfloat16),
        grid_spec=pltpu.PrefetchScalarGridSpec(
            num_scalar_prefetch=0,
            grid=(N, n_m),
            in_specs=[
                # fused weight: resident across the whole grid
                pl.BlockSpec((c2, kd_pad), lambda n, j: (0, 0)),
                # flat-image chunk with halo; streamed per (batch, m-tile)
                pl.BlockSpec((1, 1, c1, tw), lambda n, j: (n, j, 0, 0)),
            ],
            out_specs=pl.BlockSpec((1, c2, tm), lambda n, j: (n, 0, j)),
            scratch_shapes=[pltpu.VMEM((kd_pad, tm), jnp.float32)],
        ),
        compiler_params=pltpu.CompilerParams(
            dimension_semantics=("parallel", "parallel"),
            vmem_limit_bytes=vmem_limit,
        ),
        cost_estimate=cost,
    )(w_fused.astype(jnp.bfloat16), xtiles)
    return out


# ------------------------------- glue (JAX) ----------------------------------
def build_fused_weight(branch_weights, ks, groups_list, c1, c2, kmax):
    """All branches -> one (C2, Kmax*Kmax*C1) block-diagonal matmul weight.
    Column order (kh, kw, ci); a branch with K < Kmax lands on the centered taps."""
    wf = np.zeros((c2, kmax, kmax, c1), dtype=np.float32)
    c_off = 0
    for w_oihw, K, g in zip(branch_weights, ks, groups_list):
        w_np = np.asarray(w_oihw)                 # (co, c1//g, K, K)
        co, cin_pg = w_np.shape[0], w_np.shape[1]
        co_pg = co // g
        off = kmax // 2 - K // 2
        for o in range(co):
            grp = o // co_pg
            for j in range(cin_pg):
                wf[c_off + o, off:off + K, off:off + K, grp * cin_pg + j] = w_np[o, j]
        c_off += co
    assert c_off == c2
    return jnp.asarray(wf.reshape(c2, kmax * kmax * c1))


def equal_ch_split(c2, n):
    # matches torch.linspace(0, n - 1e-6, c2).floor() bucketing
    i = np.floor(np.linspace(0.0, n - 1e-6, c2))
    return [int((i == g).sum()) for g in range(n)]


def mixconv2d_forward(x_nchw, branch_weights, ks, groups_list,
                      gamma, beta, run_mean, run_var, eps=1e-5, s=1, tm=128):
    """Full MixConv2d forward. x_nchw: (N, C1, H, W) f32 -> (N, C2, H, W) f32."""
    assert s == 1, "only stride=1 (the MixConv2d default) is implemented"
    N, C1, H, W = x_nchw.shape
    C2 = gamma.shape[0]
    K = max(ks)
    p = K // 2
    Hp, Wi = H + 2 * p, W + 2 * p

    # ---- fold BN (eval): scale -> weight, bias -> extra matmul column -------
    scale = gamma / jnp.sqrt(run_var + eps)
    bias = beta - run_mean * scale
    kk_c1 = K * K * C1
    kd_pad = _round_up(kk_c1 + 1, 16)              # bf16 sublane alignment
    w_bd = build_fused_weight(branch_weights, ks, groups_list, C1, C2, K)
    w_fused = jnp.zeros((C2, kd_pad), jnp.float32)
    w_fused = w_fused.at[:, :kk_c1].set(w_bd * scale[:, None])
    w_fused = w_fused.at[:, kk_c1].set(bias)       # bias column (ones row in P)

    # ---- flattened-conv layout ----------------------------------------------
    # Pad spatially, flatten (Hp, Wi) -> Hp*Wi per channel.  For output flat
    # index m = h*Wi + w (w < W valid, w >= W junk, sliced off below) every tap
    # (kh, kw) is a pure offset d = kh*Wi + kw into the flat image, so the
    # kernel can build its patch rows with static slices (implicit im2col).
    taps = tuple(kh * Wi + kw for kh in range(K) for kw in range(K))
    d_max = taps[-1]
    me = H * Wi                                    # extended output length
    n_m = -(-me // tm)
    me_pad = n_m * tm
    tw = _round_up(tm + d_max + 1, 128)            # halo'd chunk width
    l_need = (n_m - 1) * tm + tw

    xp = jnp.pad(x_nchw.astype(jnp.bfloat16), ((0, 0), (0, 0), (p, p), (p, p)))
    xflat = xp.reshape(N, C1, Hp * Wi)
    xflat = jnp.pad(xflat, ((0, 0), (0, 0), (0, l_need - Hp * Wi)))
    # overlapping chunks = the halo materialization (stands in for an
    # element-offset/halo BlockSpec); duplication ~ (tw - tm)/tm, not 9x im2col.
    xtiles = jnp.stack([xflat[:, :, j * tm:j * tm + tw] for j in range(n_m)],
                       axis=1)                     # (N, n_m, C1, tw) bf16

    out_ext = fused_mixconv_bn_silu(
        xtiles, w_fused, taps=taps, c1=C1, c2=C2, tm=tm, me_pad=me_pad,
        kd_pad=kd_pad, bias_row=kk_c1)             # (N, C2, me_pad) bf16

    # flat order is already NCHW-major: reshape is free, slice drops the 2p
    # junk columns and casts bf16 -> f32 in one fused pass (no transpose).
    out = out_ext[:, :, :me].reshape(N, C2, H, Wi)[:, :, :, :W]
    return out.astype(jnp.float32)


# --------------------------- pure-JAX reference -------------------------------
def reference_forward(x_nchw, branch_weights, ks, groups_list,
                      gamma, beta, run_mean, run_var, eps=1e-5):
    outs = []
    for w, K, g in zip(branch_weights, ks, groups_list):
        p = K // 2
        outs.append(jax.lax.conv_general_dilated(
            x_nchw, w, window_strides=(1, 1), padding=((p, p), (p, p)),
            dimension_numbers=("NCHW", "OIHW", "NCHW"),
            feature_group_count=g))
    y = jnp.concatenate(outs, axis=1)
    yh = (y - run_mean[None, :, None, None]) / jnp.sqrt(
        run_var[None, :, None, None] + eps)
    yh = yh * gamma[None, :, None, None] + beta[None, :, None, None]
    return yh * jax.nn.sigmoid(yh)


# ------------------------------------ main ------------------------------------
if __name__ == "__main__":
    # module config (defaults): k=(1, 3), s=1, equal_ch=True
    c1, c2 = 4, 8
    ks = (1, 3)
    c_split = equal_ch_split(c2, len(ks))                # [4, 4]
    groups_list = [math.gcd(c1, cg) for cg in c_split]   # [4, 4] -> grouped convs

    key = jax.random.PRNGKey(0)
    key, kx, kbn1, kbn2, kbn3, kbn4 = jax.random.split(key, 6)
    x = jax.random.normal(kx, (2, c1, 16, 16), dtype=jnp.float32)

    # deterministic conv weights, PyTorch layout (Co, Cin/groups, K, K)
    branch_weights = []
    for K, cg, g in zip(ks, c_split, groups_list):
        key, kw = jax.random.split(key)
        branch_weights.append(
            0.1 * jax.random.normal(kw, (cg, c1 // g, K, K), dtype=jnp.float32))

    # deterministic BatchNorm2d(c2) parameters (eval mode)
    gamma = 1.0 + 0.1 * jax.random.normal(kbn1, (c2,), dtype=jnp.float32)
    beta = 0.1 * jax.random.normal(kbn2, (c2,), dtype=jnp.float32)
    run_mean = 0.1 * jax.random.normal(kbn3, (c2,), dtype=jnp.float32)
    run_var = jnp.abs(jax.random.normal(kbn4, (c2,), dtype=jnp.float32)) + 0.5

    # tm=128 keeps several M-tiles at the demo size; use 512-2048 at
    # production M (raise vmem_limit on v5e/v6e, cap ~1024 on v7x's 64 MiB).
    out = mixconv2d_forward(x, branch_weights, ks, groups_list,
                            gamma, beta, run_mean, run_var, tm=128)
    out = jax.block_until_ready(out)

    ref = jax.block_until_ready(
        reference_forward(x, branch_weights, ks, groups_list,
                          gamma, beta, run_mean, run_var))

    assert out.shape == (2, c2, 16, 16), out.shape
    # bf16 MXU operands + bf16 output store -> slightly looser tolerance vs f32
    np.testing.assert_allclose(np.asarray(out), np.asarray(ref),
                               rtol=2e-2, atol=2e-2)
    print("KERNEL_OK")
</pallas_src>

<mosaic_0001>
module attributes {stable_mosaic.version = 11 : i64} {
  func.func @kernel(%arg0: i32, %arg1: i32, %arg2: memref<8x48xbf16, #tpu.memory_space<vmem>>, %arg3: memref<1x1x4x256xbf16, #tpu.memory_space<vmem>>, %arg4: memref<1x8x128xbf16, #tpu.memory_space<vmem>>, %arg5: memref<48x128xf32, #tpu.memory_space<vmem>>) attributes {dimension_semantics = [#tpu.dimension_semantics<parallel>, #tpu.dimension_semantics<parallel>], iteration_bounds = array<i64: 2, 3>, scalar_prefetch = 0 : i64, scratch_operands = 1 : i64, tpu.core_type = #tpu.core_type<tc>, window_params = [{pipeline_mode = #tpu.pipeline_mode<synchronous>, transform_indices = @transform_0, window_bounds = array<i64: 8, 48>}, {transform_indices = @transform_1, window_bounds = array<i64: 1, 1, 4, 256>}, {transform_indices = @transform_2, window_bounds = array<i64: 1, 8, 128>}]} {
    %c0 = arith.constant 0 : index
    %c0_0 = arith.constant 0 : index
    %c0_1 = arith.constant 0 : index
    %c0_2 = arith.constant 0 : index
    %0 = vector.load %arg3[%c0, %c0_0, %c0_1, %c0_2] : memref<1x1x4x256xbf16, #tpu.memory_space<vmem>>, vector<1x1x4x128xbf16>
    %1 = vector.shape_cast %0 : vector<1x1x4x128xbf16> to vector<4x128xbf16>
    %2 = arith.extf %1 : vector<4x128xbf16> to vector<4x128xf32>
    %c0_3 = arith.constant 0 : index
    %c0_4 = arith.constant 0 : index
    %3 = vector.load %arg5[%c0_3, %c0_4] : memref<48x128xf32, #tpu.memory_space<vmem>>, vector<4x128xf32>
    tpu.vector_store %arg5[%c0_3, %c0_4], %2 {strides = array<i32>} : memref<48x128xf32, #tpu.memory_space<vmem>>, vector<4x128xf32>,
    %c0_5 = arith.constant 0 : index
    %c0_6 = arith.constant 0 : index
    %c0_7 = arith.constant 0 : index
    %c1 = arith.constant 1 : index
    %4 = vector.load %arg3[%c0_5, %c0_6, %c0_7, %c1] : memref<1x1x4x256xbf16, #tpu.memory_space<vmem>>, vector<1x1x4x128xbf16>
    %5 = vector.shape_cast %4 : vector<1x1x4x128xbf16> to vector<4x128xbf16>
    %6 = arith.extf %5 : vector<4x128xbf16> to vector<4x128xf32>
    %c4 = arith.constant 4 : index
    %c0_8 = arith.constant 0 : index
    %7 = vector.load %arg5[%c4, %c0_8] : memref<48x128xf32, #tpu.memory_space<vmem>>, vector<4x128xf32>
    tpu.vector_store %arg5[%c4, %c0_8], %6 {strides = array<i32>} : memref<48x128xf32, #tpu.memory_space<vmem>>, vector<4x128xf32>,
    %c0_9 = arith.constant 0 : index
    %c0_10 = arith.constant 0 : index
    %c0_11 = arith.constant 0 : index
    %c2 = arith.constant 2 : index
    %8 = vector.load %arg3[%c0_9, %c0_10, %c0_11, %c2] : memref<1x1x4x256xbf16, #tpu.memory_space<vmem>>, vector<1x1x4x128xbf16>
    %9 = vector.shape_cast %8 : vector<1x1x4x128xbf16> to vector<4x128xbf16>
    %10 = arith.extf %9 : vector<4x128xbf16> to vector<4x128xf32>
    %c8 = arith.constant 8 : index
    %c0_12 = arith.constant 0 : index
    %11 = vector.load %arg5[%c8, %c0_12] : memref<48x128xf32, #tpu.memory_space<vmem>>, vector<4x128xf32>
    tpu.vector_store %arg5[%c8, %c0_12], %10 {strides = array<i32>} : memref<48x128xf32, #tpu.memory_space<vmem>>, vector<4x128xf32>,
    %c0_13 = arith.constant 0 : index
    %c0_14 = arith.constant 0 : index
    %c0_15 = arith.constant 0 : index
    %c18 = arith.constant 18 : index
    %12 = vector.load %arg3[%c0_13, %c0_14, %c0_15, %c18] : memref<1x1x4x256xbf16, #tpu.memory_space<vmem>>, vector<1x1x4x128xbf16>
    %13 = vector.shape_cast %12 : vector<1x1x4x128xbf16> to vector<4x128xbf16>
    %14 = arith.extf %13 : vector<4x128xbf16> to vector<4x128xf32>
    %c12 = arith.constant 12 : index
    %c0_16 = arith.constant 0 : index
    %15 = vector.load %arg5[%c12, %c0_16] : memref<48x128xf32, #tpu.memory_space<vmem>>, vector<4x128xf32>
    tpu.vector_store %arg5[%c12, %c0_16], %14 {strides = array<i32>} : memref<48x128xf32, #tpu.memory_space<vmem>>, vector<4x128xf32>,
    %c0_17 = arith.constant 0 : index
    %c0_18 = arith.constant 0 : index
    %c0_19 = arith.constant 0 : index
    %c19 = arith.constant 19 : index
    %16 = vector.load %arg3[%c0_17, %c0_18, %c0_19, %c19] : memref<1x1x4x256xbf16, #tpu.memory_space<vmem>>, vector<1x1x4x128xbf16>
    %17 = vector.shape_cast %16 : vector<1x1x4x128xbf16> to vector<4x128xbf16>
    %18 = arith.extf %17 : vector<4x128xbf16> to vector<4x128xf32>
    %c16 = arith.constant 16 : index
    %c0_20 = arith.constant 0 : index
    %19 = vector.load %arg5[%c16, %c0_20] : memref<48x128xf32, #tpu.memory_space<vmem>>, vector<4x128xf32>
    tpu.vector_store %arg5[%c16, %c0_20], %18 {strides = array<i32>} : memref<48x128xf32, #tpu.memory_space<vmem>>, vector<4x128xf32>,
    %c0_21 = arith.constant 0 : index
    %c0_22 = arith.constant 0 : index
    %c0_23 = arith.constant 0 : index
    %c20 = arith.constant 20 : index
    %20 = vector.load %arg3[%c0_21, %c0_22, %c0_23, %c20] : memref<1x1x4x256xbf16, #tpu.memory_space<vmem>>, vector<1x1x4x128xbf16>
    %21 = vector.shape_cast %20 : vector<1x1x4x128xbf16> to vector<4x128xbf16>
    %22 = arith.extf %21 : vector<4x128xbf16> to vector<4x128xf32>
    %c20_24 = arith.constant 20 : index
    %c0_25 = arith.constant 0 : index
    %23 = vector.load %arg5[%c20_24, %c0_25] : memref<48x128xf32, #tpu.memory_space<vmem>>, vector<4x128xf32>
    tpu.vector_store %arg5[%c20_24, %c0_25], %22 {strides = array<i32>} : memref<48x128xf32, #tpu.memory_space<vmem>>, vector<4x128xf32>,
    %c0_26 = arith.constant 0 : index
    %c0_27 = arith.constant 0 : index
    %c0_28 = arith.constant 0 : index
    %c36 = arith.constant 36 : index
    %24 = vector.load %arg3[%c0_26, %c0_27, %c0_28, %c36] : memref<1x1x4x256xbf16, #tpu.memory_space<vmem>>, vector<1x1x4x128xbf16>
    %25 = vector.shape_cast %24 : vector<1x1x4x128xbf16> to vector<4x128xbf16>
    %26 = arith.extf %25 : vector<4x128xbf16> to vector<4x128xf32>
    %c24 = arith.constant 24 : index
    %c0_29 = arith.constant 0 : index
    %27 = vector.load %arg5[%c24, %c0_29] : memref<48x128xf32, #tpu.memory_space<vmem>>, vector<4x128xf32>
    tpu.vector_store %arg5[%c24, %c0_29], %26 {strides = array<i32>} : memref<48x128xf32, #tpu.memory_space<vmem>>, vector<4x128xf32>,
    %c0_30 = arith.constant 0 : index
    %c0_31 = arith.constant 0 : index
    %c0_32 = arith.constant 0 : index
    %c37 = arith.constant 37 : index
    %28 = vector.load %arg3[%c0_30, %c0_31, %c0_32, %c37] : memref<1x1x4x256xbf16, #tpu.memory_space<vmem>>, vector<1x1x4x128xbf16>
    %29 = vector.shape_cast %28 : vector<1x1x4x128xbf16> to vector<4x128xbf16>
    %30 = arith.extf %29 : vector<4x128xbf16> to vector<4x128xf32>
    %c28 = arith.constant 28 : index
    %c0_33 = arith.constant 0 : index
    %31 = vector.load %arg5[%c28, %c0_33] : memref<48x128xf32, #tpu.memory_space<vmem>>, vector<4x128xf32>
    tpu.vector_store %arg5[%c28, %c0_33], %30 {strides = array<i32>} : memref<48x128xf32, #tpu.memory_space<vmem>>, vector<4x128xf32>,
    %c0_34 = arith.constant 0 : index
    %c0_35 = arith.constant 0 : index
    %c0_36 = arith.constant 0 : index
    %c38 = arith.constant 38 : index
    %32 = vector.load %arg3[%c0_34, %c0_35, %c0_36, %c38] : memref<1x1x4x256xbf16, #tpu.memory_space<vmem>>, vector<1x1x4x128xbf16>
    %33 = vector.shape_cast %32 : vector<1x1x4x128xbf16> to vector<4x128xbf16>
    %34 = arith.extf %33 : vector<4x128xbf16> to vector<4x128xf32>
    %c32 = arith.constant 32 : index
    %c0_37 = arith.constant 0 : index
    %35 = vector.load %arg5[%c32, %c0_37] : memref<48x128xf32, #tpu.memory_space<vmem>>, vector<4x128xf32>
    tpu.vector_store %arg5[%c32, %c0_37], %34 {strides = array<i32>} : memref<48x128xf32, #tpu.memory_space<vmem>>, vector<4x128xf32>,
    %cst = arith.constant 1.000000e+00 : f32
    %36 = vector.broadcast %cst : f32 to vector<1x128xf32>
    %c36_38 = arith.constant 36 : index
    %c0_39 = arith.constant 0 : index
    %37 = vector.load %arg5[%c36_38, %c0_39] : memref<48x128xf32, #tpu.memory_space<vmem>>, vector<1x128xf32>
    tpu.vector_store %arg5[%c36_38, %c0_39], %36 {strides = array<i32>} : memref<48x128xf32, #tpu.memory_space<vmem>>, vector<1x128xf32>,
    %cst_40 = arith.constant 0.000000e+00 : f32
    %38 = vector.broadcast %cst_40 : f32 to vector<11x128xf32>
    %c37_41 = arith.constant 37 : index
    %c0_42 = arith.constant 0 : index
    %39 = vector.load %arg5[%c37_41, %c0_42] : memref<48x128xf32, #tpu.memory_space<vmem>>, vector<11x128xf32>
    tpu.vector_store %arg5[%c37_41, %c0_42], %38 {strides = array<i32>} : memref<48x128xf32, #tpu.memory_space<vmem>>, vector<11x128xf32>,
    %c0_43 = arith.constant 0 : index
    %c0_44 = arith.constant 0 : index
    %40 = vector.load %arg2[%c0_43, %c0_44] : memref<8x48xbf16, #tpu.memory_space<vmem>>, vector<8x48xbf16>
    %c0_45 = arith.constant 0 : index
    %c0_46 = arith.constant 0 : index
    %41 = vector.load %arg5[%c0_45, %c0_46] : memref<48x128xf32, #tpu.memory_space<vmem>>, vector<48x128xf32>
    %42 = arith.truncf %41 : vector<48x128xf32> to vector<48x128xbf16>
    %cst_47 = arith.constant dense<0.000000e+00> : vector<8x128xf32>
    %43 = tpu.matmul %40, %42, %cst_47 {dimension_numbers = #tpu.dot_dimension_numbers<[1], [0], [0], [1], [0, 0, 1, 1], [], []>} : vector<8x48xbf16>, vector<48x128xbf16>, vector<8x128xf32> -> vector<8x128xf32>
    %cst_48 = arith.constant 0.000000e+00 : f32
    %44 = vector.broadcast %cst_48 : f32 to vector<8x128xf32>
    %45 = arith.subf %44, %43 : vector<8x128xf32>
    %46 = math.exp %45 : vector<8x128xf32>
    %cst_49 = arith.constant 1.000000e+00 : f32
    %47 = vector.broadcast %cst_49 : f32 to vector<8x128xf32>
    %48 = arith.addf %47, %46 : vector<8x128xf32>
    %49 = tpu.reciprocal %48 : vector<8x128xf32> -> vector<8x128xf32>
    %50 = arith.mulf %43, %49 : vector<8x128xf32>
    %51 = arith.truncf %50 : vector<8x128xf32> to vector<8x128xbf16>
    %c0_50 = arith.constant 0 : index
    %c0_51 = arith.constant 0 : index
    %c0_52 = arith.constant 0 : index
    %52 = vector.load %arg4[%c0_50, %c0_51, %c0_52] : memref<1x8x128xbf16, #tpu.memory_space<vmem>>, vector<1x8x128xbf16>
    %53 = vector.shape_cast %52 : vector<1x8x128xbf16> to vector<8x128xbf16>
    %54 = vector.shape_cast %51 : vector<8x128xbf16> to vector<1x8x128xbf16>
    tpu.vector_store %arg4[%c0_50, %c0_51, %c0_52], %54 {strides = array<i32>} : memref<1x8x128xbf16, #tpu.memory_space<vmem>>, vector<1x8x128xbf16>,
    return
  }
  func.func @transform_0(%arg0: i32, %arg1: i32) -> (i32, i32) {
    %c0_i32 = arith.constant 0 : i32
    %c0_i32_0 = arith.constant 0 : i32
    %c0_i32_1 = arith.constant 0 : i32
    return %c0_i32, %c0_i32_0 : i32, i32
  }
  func.func @transform_1(%arg0: i32, %arg1: i32) -> (i32, i32, i32, i32) {
    %c0_i32 = arith.constant 0 : i32
    %c0_i32_0 = arith.constant 0 : i32
    %c0_i32_1 = arith.constant 0 : i32
    return %arg0, %arg1, %c0_i32, %c0_i32_0 : i32, i32, i32, i32
  }
  func.func @transform_2(%arg0: i32, %arg1: i32) -> (i32, i32, i32) {
    %c0_i32 = arith.constant 0 : i32
    %c0_i32_0 = arith.constant 0 : i32
    return %arg0, %c0_i32, %arg1 : i32, i32, i32
  }
}

</mosaic_0001>

<bundles_post_ra>
// kernel: tpu_custom_call.1
= control target key start
LH: loop header
LB: loop body
LE: loop exit
PB: predicated region body
PF: predicated region fallthrough
CT: control target
= control target key end

     0   :  { %s1025_s0 = inlined_call_operand.hbm [shape: bf16[8,48], index: 0, kind: input, shape index: {}]   ;;  %s1026_s1 = inlined_call_operand.hbm [shape: bf16[2,3,4,256], index: 1, kind: input, shape index: {}]   ;;  %s1027_s2 = inlined_call_operand.hbm [shape: bf16[2,8,384], index: 2, kind: output, shape index: {}]  }
   0x1   :  { %1031 = sst [smem:[#allocation15_spill]] %s1025_s0 }
   0x2   :  { %7 = vsyncpa [#allocation4], 0 }
   0x3   :  { %8 = vsyncpa [#allocation7], 0 }
   0x4   :  { %10 = vsyncpa [#allocation7 + $0x1], 0 }
   0x5   :  { %11 = vsyncpa [#allocation5], 0 }
   0x6   :  { %13 = vsyncpa [#allocation5 + $0x1], 0  ;;  %s832_s9 = smov 0   ;;  %s834_s10 = smov 0  }
   0x7   :  { %s836_s11 = smov 0   ;;  %s838_s12 = smov 0  }
   0x8   :  { %s840_s13 = smov 0   ;;  %s842_s14 = smov 0  }
   0x9   :  { %s844_s15 = smov 0   ;;  %s846_s16 = smov 0  }
   0xa LB: > { %1032 = sst [smem:[#allocation12_spill]] %s793_s14  ;;  %s470_s17 = sadd.s32 4294967295, %s801_s16   ;;  %s801_s16 = sphi %s846_s16, %s19_s16   ;;  %s797_s15 = sphi %s844_s15, %s1052_s15   ;;  %s793_s14 = sphi %s842_s14, %s1047_s14   ;;  %s789_s13 = sphi %s840_s13, %s1051_s13   ;;  %s785_s12 = sphi %s838_s12, %s1046_s12   ;;  %s781_s11 = sphi %s836_s11, %s1050_s11   ;;  %s777_s10 = sphi %s834_s10, %s1049_s10   ;;  %s773_s9 = sphi %s832_s9, %s1048_s9  }
   0xb   : > { %s471_s18 = sadd.s32 4294967294, %s801_s16   ;;  %p74_p0 = scmp.ne.s32.totalorder %s777_s10, %s773_s9 }
   0xc   : > { %p876_p1 = scmp.eq.s32.totalorder %s470_s17, 0  ;;  %p880_p2 = scmp.eq.s32.totalorder %s470_s17, 5 }
   0xd   : > { %p106_p3 = scmp.eq.s32.totalorder %s471_s18, 5  ;;  %p472_p5 = scmp.ge.s32.totalorder %s801_s16, 1 }
   0xe   : > { %p886_p4 = por %p876_p1, %p74_p0  ;;  %p113_p7 = scmp.lt.s32.totalorder %s801_s16, 7 }
   0xf   : > { %p891_p6 = por %p106_p3, %p74_p0  ;;  %s803_s24 = smov [#allocation3]  }
  0x10   : > { %p896_p8 = pnand %p472_p5, %p113_p7  ;;  %s126_s25 = sshll.u32 %s803_s24, 4  ;;  %s127_s25 = int_to_ptr.vmem [resolvable:$true] %s126_s25 }
  0x11   : > { %s1036_s22 = scalar_select %p891_p6, 1, 0 }
  0x12   : > { %p511_p9 = pneg %p896_p8  ;;  %s28_s26 = sadd.s32 1, %s793_s14 }
  0x13   : > { %1037 = sst [smem:[#allocation13_spill]] %s1036_s22  ;;  %s658_s27 = scalar_lea.vmem %s127_s25, 64 }
  0x14   : > { %p512_p10 = pnand %p511_p9, %p876_p1  ;;  %p659_p12 = scmp.ne.s32.totalorder %s127_s25, %s658_s27 }
  0x15   : > { %p666_p3 = scmp.lt.s32.totalorder %s127_s25, %s127_s25  ;;  %p667_p6 = scmp.lt.s32.totalorder %s658_s27, %s658_s27 }
  0x16   : > { %p649_p11 = pneg %p512_p10 }
  0x17   : > { %p668_p5 = por %p667_p6, %p666_p3 }
  0x18   : > { %p661_p13 = pnand %p659_p12, %p649_p11 }
  0x1a   : > { %p662_p0 = pneg %p661_p13 }
  0x1c   : > { %p669_p7 = pnand %p668_p5, %p662_p0 }
  0x1e   : > { %672 = shalt.err (!%p669_p7)
}
  0x1f   : > { %s1039_s0 = sld [smem:[#allocation15_spill]]  ;;  %p29_p9 = scmp.ge.s32.totalorder %s28_s26, 3 }
  0x20   : > { %s31_s30 = sadd.s32 1, %s797_s15  ;;  %s61_s3 = sadd.s32 1, %s781_s11 }
  0x21   : > { %p68_p6 = scmp.ne.s32.totalorder %s781_s11, %s777_s10  ;;  %s1054_s26 = smov (%p29_p9, %s28_s26), 0 }
  0x22   : > { %1040 = sst [smem:[#allocation14_spill]] %s1054_s26  ;;  %s1056_s30 = smov (!%p29_p9, %s31_s30), %s797_s15 }
  0x23   : > { %s57_s4 = ssub.s32 %s793_s14, %s1054_s26  ;;  %p69_p11 = scmp.eq.s32.totalorder %s801_s16, 0 }
  0x24   : > { %p33_p12 = scmp.ge.s32.totalorder %s1056_s30, 2  ;;  %p920_p13 = por %p880_p2, %p68_p6 }
  0x25   : > { %514 = dma.hbm_to_vmem [thread:$0]  (!%p512_p10), %s1039_s0, 64, %s127_s25, [#allocation4]  }
  0x26   : > { %p924_p10 = por %p69_p11, %p68_p6  ;;  %p524_p0 = scmp.lt.s32.totalorder %s801_s16, 6 }
  0x27   : > { %s1058_s30 = smov (%p33_p12, %s1056_s30), 0  ;;  %s137_s7 = sand.u32 1, %s781_s11  }
  0x28   : > { %s476_s8 = sshll.u32 %s793_s14, 1  ;;  %s56_s17 = ssub.s32 %s797_s15, %s1058_s30 }
  0x29   : > { %s58_s18 = sor.u32 %s57_s4, %s56_s17  ;;  %s475_s24 = sshll.u32 %s137_s7, 2 }
  0x2a   : > { %p59_p3 = scmp.eq.s32.totalorder %s58_s18, 0  ;;  %s501_s20 = smul.u32 6, %s797_s15 }
  0x2b   : > { %s141_s25 = scalar_lea.vmem [#allocation6], %s475_s24  ;;  %p943_p2 = pnand %p524_p0, %p924_p10 }
  0x2c   : > { %s151_s27 = sshll.u32 %s141_s25, 4  ;;  %s147_s29 = sadd.s32 %s501_s20, %s476_s8  ;;  %s152_s27 = int_to_ptr.vmem [resolvable:$true] %s151_s27 }
  0x2d   : > { %s937_s28 = scalar_select %p59_p3, %s781_s11, %s61_s3  }
  0x2e   : > { %s477_s0 = sshll.u32 %s147_s29, 5  ;;  %s138_s17 = scalar_lea.sflag [#allocation7], %s137_s7 }
  0x2f   : > { %s149_s4 = scalar_lea.hbm %s1026_s1, %s477_s0  ;;  %p675_p5 = pneg %p943_p2 }
  0x30   : > { %s686_s18 = scalar_lea.vmem %s152_s27, 64  ;;  %s804_s3 = smov [#allocation6]  }
  0x31   : > { %p687_p7 = scmp.ne.s32.totalorder %s152_s27, %s686_s18  ;;  %s691_s8 = sshll.u32 %s804_s3, 4  ;;  %s692_s8 = int_to_ptr.vmem [resolvable:$false] %s691_s8 }
  0x32   : > { %s693_s6 = scalar_lea.vmem %s692_s8, 128  ;;  %p694_p11 = scmp.lt.s32.totalorder %s152_s27, %s692_s8 }
  0x33   : > { %p689_p9 = pnand %p687_p7, %p675_p5  ;;  %p695_p12 = scmp.lt.s32.totalorder %s693_s6, %s686_s18 }
  0x35   : > { %p690_p6 = pneg %p689_p9  ;;  %p696_p10 = por %p695_p12, %p694_p11 }
  0x37   : > { %p697_p0 = pnand %p696_p10, %p690_p6 }
  0x39   : > { %700 = shalt.err (!%p697_p0)
}
  0x3a   : > { %518 = dma.hbm_to_vmem [thread:$0]  (!%p943_p2), %s149_s4, 64, %s152_s27, %s138_s17  }
  0x3b   : > { %160 = sbr.rel (%p896_p8) target bundleno = 464 (0x1d0), region = 28 }
  0x40   : > { %760 = dma.done.wait (%p876_p1), [#allocation4], 64  }
  0x41   : > { %762 = vsyncadd (%p876_p1), [#allocation4], 4294967232  ;;  %s961_s0 = sand.u32 1, %s777_s10  }
  0x42   : > { %s480_s14 = sshll.u32 %s961_s0, 2  ;;  %s167_s22 = scalar_lea.sflag [#allocation7], %s961_s0 }
  0x43   : > { %s170_s26 = scalar_lea.vmem [#allocation6], %s480_s14 }
  0x44   : > { %764 = dma.done.wait (%p886_p4), %s167_s22, 64  }
  0x45   : > { %766 = vsyncadd (%p886_p4), %s167_s22, 4294967232  ;;  %v805_v0 = vmov 0.0   ;;  %v806_v1 = vmov 1.0   ;;  %v279_v2 = vld [vmem:[%s170_s26] sm:$0xf]  ;;  %s807_s19 = smov 90  }
  0x46   : > { %292 = vst [vmem:[#allocation2 + $0x25] sm:$0xff] %v805_v0  ;;  %293 = vst [vmem:[#allocation2 + $0x2d] sm:$0x7] %v805_v0  ;;  %491 = vmatprep.subr.bf16.mxu0 %v805_v0  ;;  %v243_v3 = vld [vmem:[%s170_s26] sm:$0xf]  ;;  %v280_v5 = vunpack.c.l.bf16 %v279_v2  ;;  %s808_s21 = smov 108  }
  0x47   : > { %291 = vst [vmem:[#allocation2 + $0x24] sm:$0x1] %v806_v1  ;;  %v255_v4 = vld [vmem:[%s170_s26] sm:$0xf]  ;;  %v244_v6 = vunpack.c.l.bf16 %v243_v3  ;;  %s809_s23 = smov 92   ;;  %s810_s7 = smov 109  }
  0x48   : > { %v256_v7 = vunpack.c.l.bf16 %v255_v4  ;;  %v231_v8 = vld [vmem:[%s170_s26] sm:$0xf]  ;;  %v282_v13 = vcombine.high %v280_v5, %v280_v5  ;;  %s811_s24 = smov 91   ;;  %s812_s20 = smov 127   ;;  %vm815_vm0 = vmmov 0   ;;  %vm287_vm1 = vcmask 736256  }
  0x49   : > { %v267_v9 = vld [vmem:[%s170_s26] sm:$0xf]  ;;  %v232_v11 = vunpack.c.l.bf16 %v231_v8  ;;  %v246_v14 = vcombine.high %v244_v6, %v244_v6  ;;  %s813_s25 = smov 126   ;;  %s814_s27 = smov 110   ;;  %497 = vmatprep.mubr.msk.bf16.mxu0 %vm815_vm0, %v805_v0  ;;  %vm251_vm2 = vcmask 883712   ;;  %vm263_vm3 = vcmask 752640  }
  0x4a   : > { %v195_v10 = vld [vmem:[%s170_s26] sm:$0xf]  ;;  %v268_v12 = vunpack.c.l.bf16 %v267_v9  ;;  %v258_v15 = vcombine.high %v256_v7, %v256_v7  ;;  %v603_v20 = vpack.i.bf16 %v282_v13, %v280_v5  ;;  %vm239_vm4 = vcmask 891904   ;;  %s502_s29 = smul.u32 3, %s789_s13  ;;  %s190_s18 = scalar_lea.vmem [#allocation8], %s480_s14 }
  0x4b   : > { %v196_v16 = vunpack.c.l.bf16 %v195_v10  ;;  %v207_v17 = vld [vmem:[%s170_s26] sm:$0xf]  ;;  %v234_v18 = vcombine.high %v232_v11, %v232_v11  ;;  %v613_v21 = vpack.i.bf16 %v246_v14, %v244_v6  ;;  %vm275_vm5 = vcmask 744448   ;;  %v294_v14 = vld [vmem:[#allocation3] sm:$0xf]  ;;  %s372_s3 = sshll.u32 %s190_s18, 4  ;;  %s373_s3 = int_to_ptr.vmem [resolvable:$true] %s372_s3 }
  0x4c   : > { %v219_v19 = vld [vmem:[%s170_s26] sm:$0xf]  ;;  %v270_v23 = vcombine.high %v268_v12, %v268_v12  ;;  %v208_v24 = vunpack.c.l.bf16 %v207_v17  ;;  %604 = vrot.lane.b32.xlu0 %v603_v20, %s807_s19  ;;  %v618_v25 = vpack.i.bf16 %v258_v15, %v256_v7  ;;  %vm203_vm6 = vcmask 1039360   ;;  %s368_s4 = sadd.s32 %s785_s12, %s502_s29  ;;  %s701_s19 = scalar_lea.vmem %s373_s3, 64 }
  0x4d   : > { %v192_v22 = vld [vmem:[%s170_s26] sm:$0x3]  ;;  %614 = vrot.lane.b32.xlu1 %v613_v21, %s808_s21  ;;  %v608_v26 = vpack.i.bf16 %v234_v18, %v232_v11  ;;  %v198_v27 = vcombine.high %v196_v16, %v196_v16  ;;  %v220_v28 = vunpack.c.l.bf16 %v219_v19  ;;  %v300_v58 = vld [vmem:[#allocation2 + $0x28] sm:$0xff]  ;;  %vm215_vm7 = vcmask 1031168   ;;  %s484_s17 = sshll.u32 %s368_s4, 6  ;;  %s357_s26 = scalar_lea.sflag [#allocation5], %s961_s0 }
  0x4e   : > { %v193_v29 = vunpack.c.l.bf16 %v192_v22  ;;  %v210_v30 = vcombine.high %v208_v24, %v208_v24  ;;  %v623_v31 = vpack.i.bf16 %v270_v23, %v268_v12  ;;  %vm227_vm8 = vcmask 900096   ;;  %s370_s22 = scalar_lea.hbm %s1027_s2, %s484_s17  ;;  %p702_p1 = scmp.ne.s32.totalorder %s373_s3, %s701_s19 }
  0x4f   : > { %v628_v32 = vpack.i.bf16 %v198_v27, %v196_v16  ;;  %v222_v33 = vcombine.high %v220_v28, %v220_v28  ;;  %vm304_vm9 = vcmask 392192   ;;  %s816_s12 = smov [#allocation8]  }
  0x50   : > { %194 = vst [vmem:[#allocation2] sm:$0xf] %v193_v29  ;;  %609 = vrot.lane.b32.xlu0 %v608_v26, %s810_s7  ;;  %v633_v34 = vpack.i.bf16 %v210_v30, %v208_v24  ;;  %p703_p4 = pnand %p702_p1, %p920_p13  ;;  %s705_s13 = sshll.u32 %s816_s12, 4  ;;  %s706_s13 = int_to_ptr.vmem [resolvable:$false] %s705_s13 }
  0x51   : > { %619 = vrot.lane.b32.xlu1 %v618_v25, %s809_s23  ;;  %v638_v35 = vpack.i.bf16 %v222_v33, %v220_v28  ;;  %s707_s21 = scalar_lea.vmem %s706_s13, 128  ;;  %p708_p3 = scmp.lt.s32.totalorder %s373_s3, %s706_s13 }
  0x52   : > { %p704_p8 = pneg %p703_p4  ;;  %p709_p2 = scmp.lt.s32.totalorder %s707_s21, %s701_s19 }
  0x54   : > { %624 = vrot.lane.b32.xlu0 %v623_v31, %s811_s24  ;;  %p710_p5 = por %p709_p2, %p708_p3 }
  0x55   : > { %629 = vrot.lane.b32.xlu1 %v628_v32, %s812_s20 }
  0x56   : > { %p711_p7 = pnand %p710_p5, %p704_p8 }
  0x58   : > { %634 = vrot.lane.b32.xlu0 %v633_v34, %s813_s25 }
  0x59   : > { %639 = vrot.lane.b32.xlu1 %v638_v35, %s814_s27 }
  0xbe   : > { %v605_v36 = vpop.permute.xlu0 %604 }
  0xbf   : > { %v615_v37 = vpop.permute.xlu1 %614  ;;  %v607_v38 = vunpack.i.h.bf16 %v605_v36  ;;  %v606_v39 = vunpack.i.l.bf16 %v605_v36 }
  0xc0   : > { %v617_v40 = vunpack.i.h.bf16 %v615_v37  ;;  %v616_v41 = vunpack.i.l.bf16 %v615_v37 }
  0xc1   : > { %v288_v42 = vsel %vm287_vm1, %v606_v39, %v607_v38 }
  0xc2   : > { %v252_v43 = vsel %vm251_vm2, %v616_v41, %v617_v40  ;;  %290 = vst [vmem:[#allocation2 + $0x20] sm:$0xf] %v288_v42  ;;  %v610_v45 = vpop.permute.xlu0 %609 }
  0xc3   : > { %254 = vst [vmem:[#allocation2 + $0x14] sm:$0xf] %v252_v43  ;;  %v620_v44 = vpop.permute.xlu1 %619  ;;  %v612_v48 = vunpack.i.h.bf16 %v610_v45  ;;  %v611_v49 = vunpack.i.l.bf16 %v610_v45 }
  0xc4   : > { %v622_v46 = vunpack.i.h.bf16 %v620_v44  ;;  %v621_v47 = vunpack.i.l.bf16 %v620_v44 }
  0xc5   : > { %v240_v51 = vsel %vm239_vm4, %v611_v49, %v612_v48 }
  0xc6   : > { %v264_v50 = vsel %vm263_vm3, %v621_v47, %v622_v46  ;;  %242 = vst [vmem:[#allocation2 + $0x10] sm:$0xf] %v240_v51  ;;  %v625_v52 = vpop.permute.xlu0 %624 }
  0xc7   : > { %266 = vst [vmem:[#allocation2 + $0x18] sm:$0xf] %v264_v50  ;;  %v630_v53 = vpop.permute.xlu1 %629  ;;  %v627_v54 = vunpack.i.h.bf16 %v625_v52  ;;  %v626_v55 = vunpack.i.l.bf16 %v625_v52 }
  0xc8   : > { %v632_v56 = vunpack.i.h.bf16 %v630_v53  ;;  %v631_v57 = vunpack.i.l.bf16 %v630_v53 }
  0xc9   : > { %v276_v59 = vsel %vm275_vm5, %v626_v55, %v627_v54  ;;  %v299_v61 = vld [vmem:[#allocation2 + $0x20] sm:$0xff] }
  0xca   : > { %v204_v60 = vsel %vm203_vm6, %v631_v57, %v632_v56  ;;  %278 = vst [vmem:[#allocation2 + $0x1c] sm:$0xf] %v276_v59  ;;  %v635_v62 = vpop.permute.xlu0 %634  ;;  %v303_v1 = vpack.c.bf16 %v300_v58, %v299_v61 }
  0xcb   : > { %206 = vst [vmem:[#allocation2 + $0x4] sm:$0xf] %v204_v60  ;;  %v640_v63 = vpop.permute.xlu1 %639  ;;  %v637_v2 = vunpack.i.h.bf16 %v635_v62  ;;  %v636_v3 = vunpack.i.l.bf16 %v635_v62 }
  0xcc   : > { %v642_v4 = vunpack.i.h.bf16 %v640_v63  ;;  %v641_v5 = vunpack.i.l.bf16 %v640_v63  ;;  %492 = vmatpush3.bf16.msra.mxu0 %v303_v1 }
  0xcd   : > { %v216_v6 = vsel %vm215_vm7, %v636_v3, %v637_v2  ;;  %493 = vmatprep.subr.bf16.mxu0 %v805_v0  ;;  %v297_v8 = vld [vmem:[#allocation2 + $0x10] sm:$0xff] }
  0xce   : > { %v228_v7 = vsel %vm227_vm8, %v641_v5, %v642_v4  ;;  %218 = vst [vmem:[#allocation2 + $0x8] sm:$0xf] %v216_v6 }
  0xcf   : > { %230 = vst [vmem:[#allocation2 + $0xc] sm:$0xf] %v228_v7 }
  0xd1   : > { %v298_v9 = vld [vmem:[#allocation2 + $0x18] sm:$0xff] }
  0xd2   : > { %v302_v10 = vpack.c.bf16 %v298_v9, %v297_v8  ;;  %v295_v11 = vld [vmem:[#allocation2] sm:$0xff] }
  0xd4   : > { %494 = vmatpush3.bf16.msra.mxu0 %v302_v10 }
  0xd5   : > { %495 = vmatprep.subr.bf16.mxu0 %v805_v0 }
  0xd6   : > { %v296_v12 = vld [vmem:[#allocation2 + $0x8] sm:$0xff] }
  0xd7   : > { %v301_v13 = vpack.c.bf16 %v296_v12, %v295_v11 }
  0xd9   : > { %496 = vmatpush3.bf16.msra.mxu0 %v301_v13 }
  0xdc   : > { %498 = vmatmul.mubr.msk.bf16.vlgmr.msra.gmra.mxu0 %vm304_vm9, %v294_v14 }
 0x19c   : > { %v342_v15 = vpop.f32.mrf.mxu0 }
 0x19d   : > { %v348_v16 = vsub.f32 0.0, %v342_v15 }
 0x19e   : > { %v499_v17 = vpop.f32.mrf.mxu0 }
 0x19f   : > { %v349_v18 = vmul.f32 1.442695, %v348_v16 }
 0x1a0   : > { %v345_v19 = vpop.f32.mrf.mxu0 }
 0x1a1   : > { %643 = vpow2.f32 %v349_v18 }
 0x1a2   : > { %v500_v20 = vpop.f32.mrf.mxu0 }
 0x1ae   : > { %v644_v21 = vpop.eup %643 }
 0x1af   : > { %v351_v0 = vadd.f32 1.0, %v644_v21 }
 0x1b1   : > { %645 = vrcp.f32 %v351_v0 }
 0x1be   : > { %v646_v22 = vpop.eup %645 }
 0x1bf   : > { %v353_v23 = vmul.f32 %v646_v22, %v342_v15 }
 0x1c1   : > { %v354_v24 = vpack.c.bf16 %v353_v23, %v353_v23 }
 0x1c3   : > { %355 = vst [vmem:[%s190_s18] sm:$0xf] %v354_v24 }
 0x1c4   : > { %714 = shalt.err (!%p711_p7)
}
 0x1c5   : > { %s715_s14 = scalar_lea.hbm %s370_s22, 64  ;;  %s719_s7 = scalar_lea.hbm %s1027_s2, 384 }
 0x1c6   : > { %p716_p9 = scmp.ne.s32.totalorder %s370_s22, %s715_s14  ;;  %p720_p12 = scmp.lt.s32.totalorder %s370_s22, %s1027_s2 }
 0x1c7   : > { %p721_p10 = scmp.lt.s32.totalorder %s719_s7, %s715_s14 }
 0x1c8   : > { %p717_p6 = pnand %p716_p9, %p920_p13 }
 0x1c9   : > { %p722_p0 = por %p721_p10, %p720_p12 }
 0x1ca   : > { %p718_p11 = pneg %p717_p6 }
 0x1cc   : > { %p723_p1 = pnand %p722_p0, %p718_p11 }
 0x1ce   : > { %726 = shalt.err (!%p723_p1)
}
 0x1cf   : > { %509 = dma.vmem_to_hbm [thread:$0]  (%p920_p13), %s373_s3, 64, %s370_s22, %s357_s26  }
 0x1d0 PF: > { %s1044_s25 = sld [smem:[#allocation13_spill]]  ;;  %p526_p4 = scmp.ge.s32.totalorder %s801_s16, 2 }
 0x1d1   : > { %s384_s27 = sand.u32 1, %s773_s9  }
 0x1d2   : > { %s385_s29 = scalar_lea.sflag [#allocation5], %s384_s27 }
 0x1d6   : > { %p1045_p8 = scmp.ne.s32.totalorder %s1044_s25, 0 }
 0x1d8   : > { %p520_p3 = pnand %p526_p4, %p1045_p8 }
 0x1da   : > { %p521_p2 = pneg %p520_p3 }
 0x1dc   : > { %768 = dma.done.wait (%p521_p2), %s385_s29, 64  }
 0x1dd   : > { %770 = vsyncadd (%p521_p2), %s385_s29, 4294967232  ;;  %s19_s16 = sadd.s32 1, %s801_s16   ;;  %s1046_s12 = sld [smem:[#allocation12_spill]] }
 0x1de   : > { %p16_p5 = scmp.ge.s32.totalorder %s19_s16, 8   ;;  %s1047_s14 = sld [smem:[#allocation14_spill]] }
 0x1df   : > { %s1048_s9 = smov %s777_s10  ;;  %s1049_s10 = smov %s781_s11 }
 0x1e0   : > { %s1050_s11 = smov %s937_s28  ;;  %s1051_s13 = smov %s797_s15 }
 0x1e1   : > { %s1052_s15 = smov %s1058_s30  ;;  %18 = sbr.rel (!%p16_p5) target bundleno = 10 (0xa), region = 78 }
 0x1e6   :  { %390 = vsyncpa [#allocation4], 1 }
 0x1e7   :  { %392 = vsyncpa [#allocation4 + $0x1], 1 }
 0x1e8   :  { %393 = vsyncpa [#allocation7], 1 }
 0x1e9   :  { %395 = vsyncpa [#allocation7 + $0x1], 1 }
 0x1ea   :  { %396 = vsyncpa [#allocation5], 1 }
 0x1eb   :  { %398 = vsyncpa [#allocation5 + $0x1], 1 }

</bundles_post_ra>
